<compile_context>
chip_gen: v7x
topology: tpu7x:2x2x1
jax: 0.10.0
libtpu: 0.0.40
codegen_flags: <defaults>
</compile_context>

<pallas_src>
import functools

import jax
import jax.numpy as jnp
from jax.experimental import pallas as pl
from jax.experimental.pallas import tpu as pltpu


def _mlp_kernel(x_ref, w1_ref, b1_ref, w2_ref, b2_ref, o_ref):
    # Fused 2-layer MLP on one batch tile: Linear -> ReLU -> Linear.
    x = x_ref[...]                                          # (tb, xdim)
    h = jnp.dot(x, w1_ref[...],
                preferred_element_type=jnp.float32,
                precision=jax.lax.Precision.HIGHEST)        # (tb, hdim)
    h = jnp.maximum(h + b1_ref[...], 0.0)                   # bias + ReLU in f32
    o = jnp.dot(h, w2_ref[...],
                preferred_element_type=jnp.float32,
                precision=jax.lax.Precision.HIGHEST)        # (tb, udim)
    o_ref[...] = (o + b2_ref[...]).astype(o_ref.dtype)      # exact-width store


def prepare_params(w1, b1, w2, b2):
    """One-time parameter prep (arrays only — no Python ints, jit-safe).

    Weights are stored as (in_features, out_features) so the kernel computes
    x @ W + b (same math as nn.Linear); biases reshaped to (1, F) for clean
    sublane broadcast.
    """
    return {
        "w1": w1,
        "b1": b1.reshape(1, -1),
        "w2": w2,
        "b2": b2.reshape(1, -1),
    }


@functools.partial(jax.jit, static_argnames=("block_batch",))
def q_t_forward(x, params, *, block_batch=1024):
    """Pallas implementation of q_t.forward.

    Tiles only the batch axis; weights/biases stay VMEM-resident across all
    grid steps.  No input padding copy and no output lane padding — the kernel
    reads/writes exactly the bytes the op needs (it is HBM-bandwidth bound).
    """
    B, xdim = x.shape
    w1, b1, w2, b2 = params["w1"], params["b1"], params["w2"], params["b2"]
    hdim = w1.shape[1]
    udim = w2.shape[1]

    if B <= block_batch:
        tb = B              # block == full array dim: grid of 1, no constraint
    else:
        tb = block_batch    # multiple of 8/128; ragged last block is masked
    grid = (pl.cdiv(B, tb),)

    out = pl.pallas_call(
        _mlp_kernel,
        out_shape=jax.ShapeDtypeStruct((B, udim), x.dtype),
        grid=grid,
        in_specs=[
            pl.BlockSpec((tb, xdim), lambda i: (i, 0)),      # batch-tiled x
            pl.BlockSpec((xdim, hdim), lambda i: (0, 0)),    # resident weights
            pl.BlockSpec((1, hdim), lambda i: (0, 0)),
            pl.BlockSpec((hdim, udim), lambda i: (0, 0)),
            pl.BlockSpec((1, udim), lambda i: (0, 0)),
        ],
        out_specs=pl.BlockSpec((tb, udim), lambda i: (i, 0)),
        compiler_params=pltpu.CompilerParams(
            dimension_semantics=("parallel",)),              # megacore / 2-TC
    )(x, w1, b1, w2, b2)
    return out


def reference_forward(x, w1, b1, w2, b2):
    h = jnp.maximum(
        jnp.dot(x, w1, precision=jax.lax.Precision.HIGHEST) + b1.reshape(1, -1),
        0.0)
    return jnp.dot(h, w2, precision=jax.lax.Precision.HIGHEST) + b2.reshape(1, -1)


if __name__ == "__main__":
    # Shapes implied by the module: x is (batch, xdim); hdim=16 default.
    batch, xdim, hdim, udim = 8, 4, 16, 2

    key = jax.random.PRNGKey(0)
    kx, k1, k2, k3, k4 = jax.random.split(key, 5)

    x = jax.random.normal(kx, (batch, xdim), dtype=jnp.float32)

    # Deterministic parameter init (uniform, PyTorch-Linear-style bounds).
    bound1 = 1.0 / jnp.sqrt(xdim)
    bound2 = 1.0 / jnp.sqrt(hdim)
    w1 = jax.random.uniform(k1, (xdim, hdim), jnp.float32, -bound1, bound1)
    b1 = jax.random.uniform(k2, (hdim,), jnp.float32, -bound1, bound1)
    w2 = jax.random.uniform(k3, (hdim, udim), jnp.float32, -bound2, bound2)
    b2 = jax.random.uniform(k4, (udim,), jnp.float32, -bound2, bound2)

    params = prepare_params(w1, b1, w2, b2)

    # Small-batch case: single grid step, block == full batch.
    out = jax.block_until_ready(q_t_forward(x, params))
    ref = reference_forward(x, w1, b1, w2, b2)
    assert out.shape == (batch, udim)
    assert jnp.allclose(out, ref, atol=1e-5, rtol=1e-5)

    # Multi-step grid with a ragged trailing block (exercises the no-padding
    # batch tiling path): 300 rows, 128-row tiles -> 3 grid steps.
    xb = jax.random.normal(jax.random.PRNGKey(1), (300, xdim), dtype=jnp.float32)
    outb = jax.block_until_ready(q_t_forward(xb, params, block_batch=128))
    refb = reference_forward(xb, w1, b1, w2, b2)
    assert outb.shape == (300, udim)
    assert jnp.allclose(outb, refb, atol=1e-5, rtol=1e-5)

    # TODO(synk): q_t.control() in the spec returns an undefined `u` and has no
    # well-defined semantics; only forward() is implemented.
    print("KERNEL_OK")
</pallas_src>

<mosaic_0001>
module attributes {stable_mosaic.version = 11 : i64} {
  func.func @_mlp_kernel(%arg0: i32, %arg1: memref<8x4xf32, #tpu.memory_space<vmem>>, %arg2: memref<4x16xf32, #tpu.memory_space<vmem>>, %arg3: memref<1x16xf32, #tpu.memory_space<vmem>>, %arg4: memref<16x2xf32, #tpu.memory_space<vmem>>, %arg5: memref<1x2xf32, #tpu.memory_space<vmem>>, %arg6: memref<8x2xf32, #tpu.memory_space<vmem>>) attributes {dimension_semantics = [#tpu.dimension_semantics<parallel>], iteration_bounds = array<i64: 1>, scalar_prefetch = 0 : i64, scratch_operands = 0 : i64, tpu.core_type = #tpu.core_type<tc>, window_params = [{transform_indices = @transform_0, window_bounds = array<i64: 8, 4>}, {pipeline_mode = #tpu.pipeline_mode<synchronous>, transform_indices = @transform_1, window_bounds = array<i64: 4, 16>}, {pipeline_mode = #tpu.pipeline_mode<synchronous>, transform_indices = @transform_2, window_bounds = array<i64: 1, 16>}, {pipeline_mode = #tpu.pipeline_mode<synchronous>, transform_indices = @transform_3, window_bounds = array<i64: 16, 2>}, {pipeline_mode = #tpu.pipeline_mode<synchronous>, transform_indices = @transform_4, window_bounds = array<i64: 1, 2>}, {transform_indices = @transform_5, window_bounds = array<i64: 8, 2>}]} {
    %c0 = arith.constant 0 : index
    %c0_0 = arith.constant 0 : index
    %0 = vector.load %arg1[%c0, %c0_0] : memref<8x4xf32, #tpu.memory_space<vmem>>, vector<8x4xf32>
    %c0_1 = arith.constant 0 : index
    %c0_2 = arith.constant 0 : index
    %1 = vector.load %arg2[%c0_1, %c0_2] : memref<4x16xf32, #tpu.memory_space<vmem>>, vector<4x16xf32>
    %cst = arith.constant dense<0.000000e+00> : vector<8x16xf32>
    %2 = tpu.matmul %0, %1, %cst {dimension_numbers = #tpu.dot_dimension_numbers<[1], [0], [0], [1], [0, 0, 1, 1], [], []>, precision = #tpu.contract_precision<fp32>} : vector<8x4xf32>, vector<4x16xf32>, vector<8x16xf32> -> vector<8x16xf32>
    %c0_3 = arith.constant 0 : index
    %c0_4 = arith.constant 0 : index
    %3 = vector.load %arg3[%c0_3, %c0_4] : memref<1x16xf32, #tpu.memory_space<vmem>>, vector<1x16xf32>
    %4 = vector.broadcast %3 : vector<1x16xf32> to vector<8x16xf32>
    %5 = arith.addf %2, %4 : vector<8x16xf32>
    %cst_5 = arith.constant 0.000000e+00 : f32
    %6 = vector.broadcast %cst_5 : f32 to vector<8x16xf32>
    %7 = arith.maximumf %5, %6 : vector<8x16xf32>
    %c0_6 = arith.constant 0 : index
    %c0_7 = arith.constant 0 : index
    %8 = vector.load %arg4[%c0_6, %c0_7] : memref<16x2xf32, #tpu.memory_space<vmem>>, vector<16x2xf32>
    %cst_8 = arith.constant dense<0.000000e+00> : vector<8x2xf32>
    %9 = tpu.matmul %7, %8, %cst_8 {dimension_numbers = #tpu.dot_dimension_numbers<[1], [0], [0], [1], [0, 0, 1, 1], [], []>, precision = #tpu.contract_precision<fp32>} : vector<8x16xf32>, vector<16x2xf32>, vector<8x2xf32> -> vector<8x2xf32>
    %c0_9 = arith.constant 0 : index
    %c0_10 = arith.constant 0 : index
    %10 = vector.load %arg5[%c0_9, %c0_10] : memref<1x2xf32, #tpu.memory_space<vmem>>, vector<1x2xf32>
    %11 = vector.broadcast %10 : vector<1x2xf32> to vector<8x2xf32>
    %12 = arith.addf %9, %11 : vector<8x2xf32>
    %c0_11 = arith.constant 0 : index
    %c0_12 = arith.constant 0 : index
    %13 = vector.load %arg6[%c0_11, %c0_12] : memref<8x2xf32, #tpu.memory_space<vmem>>, vector<8x2xf32>
    tpu.vector_store %arg6[%c0_11, %c0_12], %12 {strides = array<i32>} : memref<8x2xf32, #tpu.memory_space<vmem>>, vector<8x2xf32>,
    return
  }
  func.func @transform_0(%arg0: i32) -> (i32, i32) {
    %c0_i32 = arith.constant 0 : i32
    %c0_i32_0 = arith.constant 0 : i32
    return %arg0, %c0_i32 : i32, i32
  }
  func.func @transform_1(%arg0: i32) -> (i32, i32) {
    %c0_i32 = arith.constant 0 : i32
    %c0_i32_0 = arith.constant 0 : i32
    %c0_i32_1 = arith.constant 0 : i32
    return %c0_i32, %c0_i32_0 : i32, i32
  }
  func.func @transform_2(%arg0: i32) -> (i32, i32) {
    %c0_i32 = arith.constant 0 : i32
    %c0_i32_0 = arith.constant 0 : i32
    %c0_i32_1 = arith.constant 0 : i32
    return %c0_i32, %c0_i32_0 : i32, i32
  }
  func.func @transform_3(%arg0: i32) -> (i32, i32) {
    %c0_i32 = arith.constant 0 : i32
    %c0_i32_0 = arith.constant 0 : i32
    %c0_i32_1 = arith.constant 0 : i32
    return %c0_i32, %c0_i32_0 : i32, i32
  }
  func.func @transform_4(%arg0: i32) -> (i32, i32) {
    %c0_i32 = arith.constant 0 : i32
    %c0_i32_0 = arith.constant 0 : i32
    %c0_i32_1 = arith.constant 0 : i32
    return %c0_i32, %c0_i32_0 : i32, i32
  }
  func.func @transform_5(%arg0: i32) -> (i32, i32) {
    %c0_i32 = arith.constant 0 : i32
    %c0_i32_0 = arith.constant 0 : i32
    return %arg0, %c0_i32 : i32, i32
  }
}

</mosaic_0001>

<bundles_post_ra>
// kernel: q_t_forward.1
= control target key start
LH: loop header
LB: loop body
LE: loop exit
PB: predicated region body
PF: predicated region fallthrough
CT: control target
= control target key end

     0   :  { %vm33_vm0 = vcmask 1043456   ;;  %vm29_vm1 = vcmask 31744   ;;  %v1109_v0 = vmov 0.0   ;;  %vm1110_vm2 = vmmov 0   ;;  %s1193_s1 = inlined_call_operand.vmem [shape: f32[4,16], index: 1, kind: input, shape index: {}]   ;;  %s1194_s0 = inlined_call_operand.vmem [shape: f32[8,4], index: 0, kind: input, shape index: {}]   ;;  %s1195_s3 = inlined_call_operand.vmem [shape: f32[16,2], index: 3, kind: input, shape index: {}]   ;;  %s1196_s2 = inlined_call_operand.vmem [shape: f32[1,16], index: 2, kind: input, shape index: {}]   ;;  %s1197_s4 = inlined_call_operand.vmem [shape: f32[1,2], index: 4, kind: input, shape index: {}]   ;;  %s1198_s5 = inlined_call_operand.vmem [shape: f32[8,2], index: 5, kind: output, shape index: {}]  }
   0x1   :  { %994 = vmatprep.subr.mxu0 %v1109_v0  ;;  %v21_v1 = vld [vmem:[%s1193_s1] sm:$0xf]  ;;  %996 = vmatprep.mubr.msk.f32.mxu0 %vm1110_vm2, %v1109_v0  ;;  %v485_v16 = vld [vmem:[%s1195_s3 + $0x8] sm:$0xff]  ;;  %v1111_v17 = vmov 0.0|0.0   ;;  %vm493_vm3 = vcmask 130048   ;;  %vm956_vm4 = vcmask 15360  }
   0x2   :  { %v20_v2 = vld [vmem:[%s1194_s0] sm:$0xff]  ;;  %v35_v3 = vsel %vm33_vm0, %v21_v1, 0  ;;  %1028 = vmatprep.mubr.msk.f32.mxu1 %vm1110_vm2, %v1109_v0  ;;  %1066 = vmatprep.subr.bf16.mxu1 %v1111_v17  ;;  %v501_v19 = vand.u32 4294901760, %v485_v16 }
   0x3   :  { %v31_v4 = vsel %vm29_vm1, %v20_v2, 0  ;;  %v38_v5 = vand.u32 4294901760, %v35_v3  ;;  %v484_v15 = vld [vmem:[%s1195_s3] sm:$0xff] }
   0x4   :  { %v103_v6 = vand.u32 4294901760, %v31_v4  ;;  %v498_v18 = vand.u32 4294901760, %v484_v15  ;;  %v583_v22 = vsub.f32 %v485_v16, %v501_v19  ;;  %v962_v32 = vld [vmem:[%s1196_s2] ss:$0 sm:$0xff] }
   0x5   :  { %995 = vmatpush3.msra.mxu0 %v38_v5  ;;  %v115_v7 = vsub.f32 %v35_v3, %v38_v5  ;;  %v963_v43 = vld [vmem:[%s1197_s4] ss:$0 sm:$0xff] }
   0x6   :  { %v104_v8 = vsub.f32 %v31_v4, %v103_v6  ;;  %999 = vmatprep.subr.mxu0 %v1109_v0  ;;  %v1067_v20 = vpack.c.bf16 %v501_v19, %v498_v18  ;;  %v576_v21 = vsub.f32 %v484_v15, %v498_v18  ;;  %v584_v24 = vand.u32 4294901760, %v583_v22 }
   0x7   :  { %v116_v10 = vand.u32 4294901760, %v115_v7 }
   0x8   :  { %v105_v9 = vand.u32 4294901760, %v104_v8  ;;  %1068 = vmatpush3.bf16.msra.mxu1 %v1067_v20  ;;  %v577_v23 = vand.u32 4294901760, %v576_v21  ;;  %v585_v26 = vsub.f32 %v583_v22, %v584_v24  ;;  %v1073_v30 = vpack.c.bf16 %v583_v22, %v576_v21 }
   0x9   :  { %v117_v12 = vsub.f32 %v115_v7, %v116_v10  ;;  %1069 = vmatprep.subr.bf16.mxu1 %v1111_v17 }
   0xa   :  { %v106_v11 = vsub.f32 %v104_v8, %v105_v9  ;;  %v578_v25 = vsub.f32 %v576_v21, %v577_v23  ;;  %v586_v28 = vand.u32 4294901760, %v585_v26  ;;  %v1079_v31 = vpack.c.bf16 %v584_v24, %v577_v23 }
   0xb   :  { %v118_v14 = vand.u32 4294901760, %v117_v12 }
   0xc   :  { %v107_v13 = vand.u32 4294901760, %v106_v11  ;;  %v579_v27 = vand.u32 4294901760, %v578_v25 }
   0xe   :  { %997 = vmatmul.mubr.f32.vlgmr.msra.gmra.mrb[0].mxu0 %v107_v13  ;;  %v1070_v29 = vpack.c.bf16 %v586_v28, %v579_v27 }
   0xf   :  { %1000 = vmatpush3.msra.mxu0 %v118_v14  ;;  %1001 = vmatprep.mubr.msk.f32.mxu0 %vm1110_vm2, %v1109_v0 }
  0x10   :  { %1004 = vmatprep.subr.mxu0 %v1109_v0 }
  0x16   :  { %1002 = vmatmul.mubr.f32.vlgmr.msra.gmra.mrb[0].mxu0 %v103_v6 }
  0x17   :  { %1005 = vmatpush3.msra.mxu0 %v115_v7  ;;  %1006 = vmatprep.mubr.msk.f32.mxu0 %vm1110_vm2, %v1109_v0 }
  0x18   :  { %1009 = vmatprep.subr.mxu0 %v1109_v0 }
  0x1e   :  { %1007 = vmatmul.mubr.f32.vlgmr.msra.gmra.mrb[0].mxu0 %v104_v8 }
  0x1f   :  { %1010 = vmatpush3.msra.mxu0 %v38_v5  ;;  %1011 = vmatprep.mubr.msk.f32.mxu0 %vm1110_vm2, %v1109_v0 }
  0x20   :  { %1014 = vmatprep.subr.mxu0 %v1109_v0 }
  0x26   :  { %1012 = vmatmul.mubr.f32.vlgmr.msra.gmra.mrb[0].mxu0 %v105_v9 }
  0x27   :  { %1015 = vmatpush3.msra.mxu0 %v116_v10  ;;  %1016 = vmatprep.mubr.msk.f32.mxu0 %vm1110_vm2, %v1109_v0 }
  0x28   :  { %1019 = vmatprep.subr.mxu0 %v1109_v0 }
  0x2e   :  { %1017 = vmatmul.mubr.f32.vlgmr.msra.gmra.mrb[0].mxu0 %v103_v6 }
  0x2f   :  { %1020 = vmatpush3.msra.mxu0 %v38_v5  ;;  %1021 = vmatprep.mubr.msk.f32.mxu0 %vm1110_vm2, %v1109_v0 }
  0x36   :  { %1022 = vmatmul.mubr.f32.vlgmr.msra.gmra.mrb[0].mxu0 %v103_v6 }
 0x109   :  { %v479_v33 = vpop.f32.mrb[0].mxu0 }
 0x10a   :  { %v1084_v34 = vadd.f32 %v962_v32, %v479_v33  ;;  %v1023_v35 = vpop.f32.mrb[1].mxu0 }
 0x10c   :  { %v483_v36 = vmax.f32 %v1084_v34, 0.0 }
 0x10e   :  { %v495_v37 = vsel %vm493_vm3, %v483_v36, 0 }
 0x10f   :  { %v564_v38 = vand.u32 4294901760, %v495_v37 }
 0x111   :  { %v565_v39 = vsub.f32 %v495_v37, %v564_v38 }
 0x113   :  { %v566_v40 = vand.u32 4294901760, %v565_v39 }
 0x115   :  { %v567_v41 = vsub.f32 %v565_v39, %v566_v40 }
 0x117   :  { %v568_v42 = vand.u32 4294901760, %v567_v41 }
 0x119   :  { %1029 = vmatmul.mubr.f32.vlgmr.msra.gmra.mrb[0].mxu1 %v568_v42 }
 0x11a   :  { %1071 = vmatpush3.bf16.msra.mxu1 %v1070_v29  ;;  %1035 = vmatprep.mubr.msk.f32.mxu1 %vm1110_vm2, %v1109_v0 }
 0x11b   :  { %1072 = vmatprep.subr.bf16.mxu1 %v1111_v17 }
 0x121   :  { %1036 = vmatmul.mubr.f32.vlgmr.msra.gmra.mrb[0].mxu1 %v564_v38 }
 0x122   :  { %1074 = vmatpush3.bf16.msra.mxu1 %v1073_v30  ;;  %1042 = vmatprep.mubr.msk.f32.mxu1 %vm1110_vm2, %v1109_v0 }
 0x123   :  { %1075 = vmatprep.subr.bf16.mxu1 %v1111_v17 }
 0x129   :  { %1043 = vmatmul.mubr.f32.vlgmr.msra.gmra.mrb[0].mxu1 %v565_v39 }
 0x12a   :  { %1077 = vmatpush3.bf16.msra.mxu1 %v1067_v20  ;;  %1049 = vmatprep.mubr.msk.f32.mxu1 %vm1110_vm2, %v1109_v0 }
 0x12b   :  { %1078 = vmatprep.subr.bf16.mxu1 %v1111_v17 }
 0x131   :  { %1050 = vmatmul.mubr.f32.vlgmr.msra.gmra.mrb[0].mxu1 %v566_v40 }
 0x132   :  { %1080 = vmatpush3.bf16.msra.mxu1 %v1079_v31  ;;  %1056 = vmatprep.mubr.msk.f32.mxu1 %vm1110_vm2, %v1109_v0 }
 0x133   :  { %1081 = vmatprep.subr.bf16.mxu1 %v1111_v17 }
 0x139   :  { %1057 = vmatmul.mubr.f32.vlgmr.msra.gmra.mrb[0].mxu1 %v564_v38 }
 0x13a   :  { %1083 = vmatpush3.bf16.msra.mxu1 %v1067_v20  ;;  %1063 = vmatprep.mubr.msk.f32.mxu1 %vm1110_vm2, %v1109_v0 }
 0x141   :  { %1064 = vmatmul.mubr.f32.vlgmr.msra.gmra.mrb[0].mxu1 %v564_v38 }
 0x214   :  { %v952_v44 = vpop.f32.mrb[0].mxu1 }
 0x215   :  { %v1085_v45 = vadd.f32 %v963_v43, %v952_v44  ;;  %v1065_v46 = vpop.f32.mrb[1].mxu1 }
 0x217   :  { %957 = vst.msk [vmem:[%s1198_s5] sm:$0xff] %vm956_vm4, %v1085_v45 }

</bundles_post_ra>
